<compile_context>
chip_gen: v6e
topology: v6e:2x2x1
jax: 0.10.0
libtpu: 0.0.40
codegen_flags: <defaults>
</compile_context>

<pallas_src>
import functools

import jax
import jax.numpy as jnp
from jax.experimental import pallas as pl
from jax.experimental.pallas import tpu as pltpu

_VMEM_LIMIT = 32 * 1024 * 1024  # safe scoped-VMEM request on v5e / v6e / v7x


# ------------------------------ tiling helpers ---------------------------------

def _sublane_align(dtype):
    itemsize = jnp.dtype(dtype).itemsize
    return {4: 8, 2: 16, 1: 32}.get(itemsize, 8)


def _tile(dim, target, align):
    """Full dim if it fits in `target`, else the largest `align`-multiple divisor."""
    if dim <= target:
        return dim
    t = (target // align) * align
    while t >= align and dim % t != 0:
        t -= align
    if t >= align and dim % t == 0:
        return t
    # TODO(synk): no aligned divisor <= target; fall back to the full dim.  Fine
    # at demo scale; pad the array / handle remainder blocks for awkward large dims.
    return dim


# ------------------------------- Pallas kernels --------------------------------

def _matmul_kernel(x_ref, w_ref, o_ref, acc_ref):
    # x: [tm, tk], w: [tk, tn]; accumulate over the K grid axis (last, "arbitrary").
    @pl.when(pl.program_id(2) == 0)
    def _():
        acc_ref[...] = jnp.zeros_like(acc_ref)

    acc_ref[...] += jnp.dot(
        x_ref[...], w_ref[...], preferred_element_type=jnp.float32
    )

    @pl.when(pl.program_id(2) == pl.num_programs(2) - 1)
    def _():
        o_ref[...] = acc_ref[...].astype(o_ref.dtype)


def _make_sdpa_kernel(has_mask, with_attn, inv_temp):
    """Scaled-dot-product-attention kernel for one (batch, head, q-tile) step.

    q: [tq, d_k], k: [Lk, d_k], v: [Lk, d_v], mask (optional): [tq, Lk].
    Writes o: [tq, d_v] and optionally attn: [tq, Lk].
    """

    def body(q_ref, k_ref, v_ref, mask_ref, o_ref, attn_ref):
        # Contract last dims directly (no k.T); MXU with f32 accumulation.
        s = jax.lax.dot_general(
            q_ref[...], k_ref[...], (((1,), (1,)), ((), ())),
            preferred_element_type=jnp.float32,
        )  # [tq, Lk] f32
        s = s * inv_temp  # one VPU mul on the f32 scores
        if has_mask:
            s = jnp.where(mask_ref[...] != 0, s, -1e9)
        m = jnp.max(s, axis=-1, keepdims=True)
        e = jnp.exp(s - m)
        denom = jnp.sum(e, axis=-1, keepdims=True)
        p = e / denom  # exact divide: attn is a returned output checked tightly
        o = jnp.dot(p.astype(v_ref.dtype), v_ref[...],
                    preferred_element_type=jnp.float32)  # [tq, d_v]
        o_ref[...] = o.astype(o_ref.dtype)
        if with_attn:
            attn_ref[...] = p.astype(attn_ref.dtype)

    def kernel(*refs):
        idx = 3
        q_ref, k_ref, v_ref = refs[0], refs[1], refs[2]
        mask_ref = None
        if has_mask:
            mask_ref = refs[idx]
            idx += 1
        o_ref = refs[idx]
        idx += 1
        attn_ref = refs[idx] if with_attn else None
        body(q_ref, k_ref, v_ref, mask_ref, o_ref, attn_ref)

    return kernel


def _fc_res_ln_kernel(x_ref, w_ref, res_ref, gamma_ref, beta_ref, o_ref, acc_ref, *, eps):
    # x: [tm, tk], w: [tk, d_model], res: [tm, d_model].  K-tiled contraction
    # with f32 accumulator; residual + LayerNorm fused on the last K step.
    @pl.when(pl.program_id(1) == 0)
    def _():
        acc_ref[...] = jnp.zeros_like(acc_ref)

    acc_ref[...] += jnp.dot(
        x_ref[...], w_ref[...], preferred_element_type=jnp.float32
    )

    @pl.when(pl.program_id(1) == pl.num_programs(1) - 1)
    def _():
        y = acc_ref[...] + res_ref[...].astype(jnp.float32)
        mean = jnp.mean(y, axis=-1, keepdims=True)
        var = jnp.mean((y - mean) * (y - mean), axis=-1, keepdims=True)
        y = (y - mean) * jax.lax.rsqrt(var + eps)
        y = y * gamma_ref[...].astype(jnp.float32) + beta_ref[...].astype(jnp.float32)
        o_ref[...] = y.astype(o_ref.dtype)


# --------------------------------- Wrappers ------------------------------------

def pallas_matmul(x2d, w, *, tm_target=512, tn_target=512, tk_target=512):
    M, K = x2d.shape
    K2, N = w.shape
    assert K == K2
    tm = _tile(M, tm_target, _sublane_align(x2d.dtype))
    tn = _tile(N, tn_target, 128)
    tk = _tile(K, tk_target, 128)
    grid = (M // tm, N // tn, K // tk)
    return pl.pallas_call(
        _matmul_kernel,
        out_shape=jax.ShapeDtypeStruct((M, N), x2d.dtype),
        grid=grid,
        in_specs=[
            pl.BlockSpec((tm, tk), lambda i, j, kk: (i, kk)),
            pl.BlockSpec((tk, tn), lambda i, j, kk: (kk, j)),
        ],
        out_specs=pl.BlockSpec((tm, tn), lambda i, j, kk: (i, j)),
        scratch_shapes=[pltpu.VMEM((tm, tn), jnp.float32)],
        compiler_params=pltpu.CompilerParams(
            dimension_semantics=("parallel", "parallel", "arbitrary"),
            vmem_limit_bytes=_VMEM_LIMIT,
        ),
    )(x2d, w)


def pallas_attention(qh, kh, vh, mask, temperature, out_dtype, *,
                     with_attn=True, tq_target=512):
    """qh/kh/vh: head-major [B, H, L, d].  mask: [B, Lq, Lk] int32 or None."""
    B, H, Lq, d_k = qh.shape
    Lk = kh.shape[2]
    d_v = vh.shape[3]
    tq = _tile(Lq, tq_target, _sublane_align(qh.dtype))
    has_mask = mask is not None

    kernel = _make_sdpa_kernel(has_mask, with_attn, 1.0 / temperature)

    in_specs = [
        pl.BlockSpec((None, None, tq, d_k), lambda b, h, qi: (b, h, qi, 0)),
        pl.BlockSpec((None, None, Lk, d_k), lambda b, h, qi: (b, h, 0, 0)),
        pl.BlockSpec((None, None, Lk, d_v), lambda b, h, qi: (b, h, 0, 0)),
    ]
    args = [qh, kh, vh]
    if has_mask:
        in_specs.append(pl.BlockSpec((None, tq, Lk), lambda b, h, qi: (b, qi, 0)))
        args.append(mask)

    out_shapes = [jax.ShapeDtypeStruct((B, H, Lq, d_v), out_dtype)]
    out_specs = [pl.BlockSpec((None, None, tq, d_v), lambda b, h, qi: (b, h, qi, 0))]
    if with_attn:
        out_shapes.append(jax.ShapeDtypeStruct((B, H, Lq, Lk), jnp.float32))
        out_specs.append(
            pl.BlockSpec((None, None, tq, Lk), lambda b, h, qi: (b, h, qi, 0)))

    res = pl.pallas_call(
        kernel,
        out_shape=tuple(out_shapes),
        grid=(B, H, Lq // tq),
        in_specs=in_specs,
        out_specs=tuple(out_specs),
        compiler_params=pltpu.CompilerParams(
            dimension_semantics=("parallel", "parallel", "parallel"),
            vmem_limit_bytes=_VMEM_LIMIT,
        ),
    )(*args)
    if with_attn:
        return res[0], res[1]
    return res[0], None


def pallas_fc_residual_layernorm(x2d, w_fc, res2d, gamma, beta, eps=1e-6,
                                 tm_target=256, tk_target=512):
    M, Kv = x2d.shape
    d_model = w_fc.shape[1]
    tm = _tile(M, tm_target, _sublane_align(x2d.dtype))
    tk = _tile(Kv, tk_target, 128)
    grid = (M // tm, Kv // tk)
    kernel = functools.partial(_fc_res_ln_kernel, eps=eps)
    return pl.pallas_call(
        kernel,
        out_shape=jax.ShapeDtypeStruct((M, d_model), x2d.dtype),
        grid=grid,
        in_specs=[
            pl.BlockSpec((tm, tk), lambda i, kk: (i, kk)),
            pl.BlockSpec((tk, d_model), lambda i, kk: (kk, 0)),
            pl.BlockSpec((tm, d_model), lambda i, kk: (i, 0)),
            pl.BlockSpec((1, d_model), lambda i, kk: (0, 0)),
            pl.BlockSpec((1, d_model), lambda i, kk: (0, 0)),
        ],
        out_specs=pl.BlockSpec((tm, d_model), lambda i, kk: (i, 0)),
        scratch_shapes=[pltpu.VMEM((tm, d_model), jnp.float32)],
        compiler_params=pltpu.CompilerParams(
            dimension_semantics=("parallel", "arbitrary"),
            vmem_limit_bytes=_VMEM_LIMIT,
        ),
    )(x2d, w_fc, res2d, gamma.reshape(1, d_model), beta.reshape(1, d_model))


def multi_head_attention(q, k, v, params, n_head, d_k, d_v, mask=None,
                         return_attn=True):
    """q,k,v: [B, L, d_model]. Returns (out [B,Lq,d_model], attn [B,H,Lq,Lk])."""
    B, Lq, d_model = q.shape
    Lk = k.shape[1]
    Lv = v.shape[1]
    temperature = d_k ** 0.5
    residual = q
    # TODO(synk): dropout layers are identity (eval mode).

    # Projections (tiled Pallas matmuls on flattened [B*L, d_model]); fused
    # single matmul when this is self-attention (one activation read).
    if (q is k) and (k is v):
        w_cat = jnp.concatenate(
            [params["w_qs"], params["w_ks"], params["w_vs"]], axis=1)
        proj = pallas_matmul(q.reshape(B * Lq, d_model), w_cat)
        c = n_head * d_k
        qp, kp, vp = proj[:, :c], proj[:, c:2 * c], proj[:, 2 * c:]
    else:
        qp = pallas_matmul(q.reshape(B * Lq, d_model), params["w_qs"])
        kp = pallas_matmul(k.reshape(B * Lk, d_model), params["w_ks"])
        vp = pallas_matmul(v.reshape(B * Lv, d_model), params["w_vs"])

    # One head-major host transpose so each (batch, head) grid step sees a
    # contiguous, lane-aligned [L, d] slab.
    qh = qp.reshape(B, Lq, n_head, d_k).transpose(0, 2, 1, 3)
    kh = kp.reshape(B, Lk, n_head, d_k).transpose(0, 2, 1, 3)
    vh = vp.reshape(B, Lv, n_head, d_v).transpose(0, 2, 1, 3)

    mask_i = None
    if mask is not None:
        mask_i = jnp.broadcast_to(mask, (B, Lq, Lk)).astype(jnp.int32)

    out_h, attn = pallas_attention(
        qh, kh, vh, mask_i, temperature, q.dtype, with_attn=return_attn)

    # Merge heads back, then output projection + residual + LayerNorm.
    out2d = out_h.transpose(0, 2, 1, 3).reshape(B * Lq, n_head * d_v)
    out = pallas_fc_residual_layernorm(
        out2d, params["fc"], residual.reshape(B * Lq, d_model),
        params["ln_gamma"], params["ln_beta"], eps=1e-6,
    ).reshape(B, Lq, d_model)

    return out, attn


# ------------------------------ Reference (pure JAX) ---------------------------

def reference_mha(q, k, v, params, n_head, d_k, d_v, mask=None):
    B, Lq, d_model = q.shape
    Lk = k.shape[1]
    temperature = d_k ** 0.5
    residual = q
    qh = (q.reshape(-1, d_model) @ params["w_qs"]).reshape(B, Lq, n_head, d_k).transpose(0, 2, 1, 3)
    kh = (k.reshape(-1, d_model) @ params["w_ks"]).reshape(B, Lk, n_head, d_k).transpose(0, 2, 1, 3)
    vh = (v.reshape(-1, d_model) @ params["w_vs"]).reshape(B, Lk, n_head, d_v).transpose(0, 2, 1, 3)
    scores = jnp.einsum("bhqd,bhkd->bhqk", qh / temperature, kh)
    if mask is not None:
        m = jnp.broadcast_to(mask, (B, Lq, Lk))[:, None, :, :]
        scores = jnp.where(m == 0, -1e9, scores)
    attn = jax.nn.softmax(scores, axis=-1)
    out = jnp.einsum("bhqk,bhkd->bhqd", attn, vh)
    out = out.transpose(0, 2, 1, 3).reshape(B, Lq, n_head * d_v)
    y = out @ params["fc"] + residual
    mean = jnp.mean(y, axis=-1, keepdims=True)
    var = jnp.mean((y - mean) ** 2, axis=-1, keepdims=True)
    y = (y - mean) / jnp.sqrt(var + 1e-6)
    y = y * params["ln_gamma"] + params["ln_beta"]
    return y, attn


# ----------------------------------- Main --------------------------------------

if __name__ == "__main__":
    B, L, d_model = 2, 8, 32
    n_head, d_k, d_v = 2, 16, 16

    key = jax.random.PRNGKey(0)
    keys = jax.random.split(key, 9)

    # Deterministic parameter init (weights stored transposed: x @ W).
    params = {
        "w_qs": jax.random.normal(keys[0], (d_model, n_head * d_k), jnp.float32) * 0.1,
        "w_ks": jax.random.normal(keys[1], (d_model, n_head * d_k), jnp.float32) * 0.1,
        "w_vs": jax.random.normal(keys[2], (d_model, n_head * d_v), jnp.float32) * 0.1,
        "fc":   jax.random.normal(keys[3], (n_head * d_v, d_model), jnp.float32) * 0.1,
        "ln_gamma": jnp.ones((d_model,), jnp.float32),
        "ln_beta":  jnp.zeros((d_model,), jnp.float32),
    }

    # --- Test 1: self-attention (fused QKV projection), no mask ---------------
    x = jax.random.normal(keys[4], (B, L, d_model), jnp.float32)
    out, attn = multi_head_attention(x, x, x, params, n_head, d_k, d_v)
    jax.block_until_ready(out)
    jax.block_until_ready(attn)
    out_ref, attn_ref = reference_mha(x, x, x, params, n_head, d_k, d_v)
    assert out.shape == (B, L, d_model)
    assert attn.shape == (B, n_head, L, L)
    assert jnp.allclose(out, out_ref, atol=1e-4, rtol=1e-4)
    assert jnp.allclose(attn, attn_ref, atol=1e-4, rtol=1e-4)

    # --- Test 2: cross-attention with a mask (unfused projections) ------------
    q2 = jax.random.normal(keys[5], (B, L, d_model), jnp.float32)
    k2 = jax.random.normal(keys[6], (B, L, d_model), jnp.float32)
    v2 = jax.random.normal(keys[7], (B, L, d_model), jnp.float32)
    mask = (jax.random.uniform(keys[8], (B, 1, L)) > 0.3).astype(jnp.int32)
    out2, attn2 = multi_head_attention(q2, k2, v2, params, n_head, d_k, d_v, mask=mask)
    jax.block_until_ready(out2)
    out2_ref, attn2_ref = reference_mha(q2, k2, v2, params, n_head, d_k, d_v, mask=mask)
    assert jnp.allclose(out2, out2_ref, atol=1e-4, rtol=1e-4)
    assert jnp.allclose(attn2, attn2_ref, atol=1e-4, rtol=1e-4)

    # --- Test 3: attn writeback skipped (bandwidth-saving flag) ---------------
    out3, attn3 = multi_head_attention(x, x, x, params, n_head, d_k, d_v,
                                       return_attn=False)
    jax.block_until_ready(out3)
    assert attn3 is None
    assert jnp.allclose(out3, out_ref, atol=1e-4, rtol=1e-4)

    print("KERNEL_OK")
</pallas_src>

<mosaic_0001>
module attributes {stable_mosaic.version = 11 : i64} {
  func.func @_matmul_kernel(%arg0: i32, %arg1: i32, %arg2: i32, %arg3: memref<16x32xf32, #tpu.memory_space<vmem>>, %arg4: memref<32x96xf32, #tpu.memory_space<vmem>>, %arg5: memref<16x96xf32, #tpu.memory_space<vmem>>, %arg6: memref<16x96xf32, #tpu.memory_space<vmem>>) attributes {dimension_semantics = [#tpu.dimension_semantics<parallel>, #tpu.dimension_semantics<parallel>, #tpu.dimension_semantics<arbitrary>], iteration_bounds = array<i64: 1, 1, 1>, scalar_prefetch = 0 : i64, scratch_operands = 1 : i64, tpu.core_type = #tpu.core_type<tc>, window_params = [{transform_indices = @transform_0, window_bounds = array<i64: 16, 32>}, {transform_indices = @transform_1, window_bounds = array<i64: 32, 96>}, {transform_indices = @transform_2, window_bounds = array<i64: 16, 96>}]} {
    %c0_i32 = arith.constant 0 : i32
    %0 = arith.cmpi eq, %arg2, %c0_i32 : i32
    %1 = arith.extui %0 : i1 to i32
    %c0_i32_0 = arith.constant 0 : i32
    %2 = arith.cmpi ne, %1, %c0_i32_0 : i32
    scf.if %2 {
      %cst_10 = arith.constant 0.000000e+00 : f32
      %12 = vector.broadcast %cst_10 : f32 to vector<16x96xf32>
      %c0_11 = arith.constant 0 : index
      %c0_12 = arith.constant 0 : index
      %13 = vector.load %arg6[%c0_11, %c0_12] : memref<16x96xf32, #tpu.memory_space<vmem>>, vector<16x96xf32>
      tpu.vector_store %arg6[%c0_11, %c0_12], %12 {strides = array<i32>} : memref<16x96xf32, #tpu.memory_space<vmem>>, vector<16x96xf32>,
    } else {
    }
    %c0 = arith.constant 0 : index
    %c0_1 = arith.constant 0 : index
    %3 = vector.load %arg6[%c0, %c0_1] : memref<16x96xf32, #tpu.memory_space<vmem>>, vector<16x96xf32>
    %c0_2 = arith.constant 0 : index
    %c0_3 = arith.constant 0 : index
    %4 = vector.load %arg3[%c0_2, %c0_3] : memref<16x32xf32, #tpu.memory_space<vmem>>, vector<16x32xf32>
    %c0_4 = arith.constant 0 : index
    %c0_5 = arith.constant 0 : index
    %5 = vector.load %arg4[%c0_4, %c0_5] : memref<32x96xf32, #tpu.memory_space<vmem>>, vector<32x96xf32>
    %cst = arith.constant dense<0.000000e+00> : vector<16x96xf32>
    %6 = tpu.matmul %4, %5, %cst {dimension_numbers = #tpu.dot_dimension_numbers<[1], [0], [0], [1], [0, 0, 1, 1], [], []>} : vector<16x32xf32>, vector<32x96xf32>, vector<16x96xf32> -> vector<16x96xf32>
    %7 = arith.addf %3, %6 : vector<16x96xf32>
    %c0_6 = arith.constant 0 : index
    %c0_7 = arith.constant 0 : index
    %8 = vector.load %arg6[%c0_6, %c0_7] : memref<16x96xf32, #tpu.memory_space<vmem>>, vector<16x96xf32>
    tpu.vector_store %arg6[%c0_6, %c0_7], %7 {strides = array<i32>} : memref<16x96xf32, #tpu.memory_space<vmem>>, vector<16x96xf32>,
    %c0_i32_8 = arith.constant 0 : i32
    %9 = arith.cmpi eq, %arg2, %c0_i32_8 : i32
    %10 = arith.extui %9 : i1 to i32
    %c0_i32_9 = arith.constant 0 : i32
    %11 = arith.cmpi ne, %10, %c0_i32_9 : i32
    scf.if %11 {
      %c0_10 = arith.constant 0 : index
      %c0_11 = arith.constant 0 : index
      %12 = vector.load %arg6[%c0_10, %c0_11] : memref<16x96xf32, #tpu.memory_space<vmem>>, vector<16x96xf32>
      %c0_12 = arith.constant 0 : index
      %c0_13 = arith.constant 0 : index
      %13 = vector.load %arg5[%c0_12, %c0_13] : memref<16x96xf32, #tpu.memory_space<vmem>>, vector<16x96xf32>
      tpu.vector_store %arg5[%c0_12, %c0_13], %12 {strides = array<i32>} : memref<16x96xf32, #tpu.memory_space<vmem>>, vector<16x96xf32>,
    } else {
    }
    return
  }
  func.func @transform_0(%arg0: i32, %arg1: i32, %arg2: i32) -> (i32, i32) {
    %c0_i32 = arith.constant 0 : i32
    return %arg0, %arg2 : i32, i32
  }
  func.func @transform_1(%arg0: i32, %arg1: i32, %arg2: i32) -> (i32, i32) {
    %c0_i32 = arith.constant 0 : i32
    return %arg2, %arg1 : i32, i32
  }
  func.func @transform_2(%arg0: i32, %arg1: i32, %arg2: i32) -> (i32, i32) {
    %c0_i32 = arith.constant 0 : i32
    return %arg0, %arg1 : i32, i32
  }
}

</mosaic_0001>

<bundles_post_ra>
// kernel: tpu_custom_call.1
= control target key start
LH: loop header
LB: loop body
LE: loop exit
PB: predicated region body
PF: predicated region fallthrough
CT: control target
= control target key end

     0   :  { %7 = vsyncpa [#allocation4], 0  ;;  %s305_s0 = inlined_call_operand.hbm [shape: f32[16,32], index: 0, kind: input, shape index: {}]   ;;  %s306_s1 = inlined_call_operand.hbm [shape: f32[32,96], index: 1, kind: input, shape index: {}]   ;;  %s307_s2 = inlined_call_operand.hbm [shape: f32[16,96], index: 2, kind: output, shape index: {}]  }
   0x1   :  { %8 = vsyncpa [#allocation7], 0 }
   0x2   :  { %9 = vsyncpa [#allocation5], 0  ;;  %s258_s9 = smov [#allocation3]  }
   0x3   :  { %s15_s10 = sshll.u32 %s258_s9, 4  ;;  %s16_s10 = int_to_ptr.vmem [resolvable:$true] %s15_s10 }
   0x4   :  { %s200_s11 = scalar_lea.vmem %s16_s10, 256  ;;  %p205_p1 = scmp.lt.s32.totalorder %s16_s10, %s16_s10 }
   0x5   :  { %p201_p0 = scmp.ne.s32.totalorder %s16_s10, %s200_s11  ;;  %p206_p2 = scmp.lt.s32.totalorder %s200_s11, %s200_s11 }
   0x7   :  { %p207_p3 = por %p206_p2, %p205_p1 }
   0x9   :  { %p208_p4 = pnand %p207_p3, %p201_p0 }
   0xb   :  { %211 = shalt.err (!%p208_p4)
}
   0xc   :  { %s259_s12 = smov 128   ;;  %s260_s13 = smov 8  }
   0xd   :  { %21 = dma.hbm_to_vmem [thread:$0]  %s305_s0, 256, %s16_s10, [#allocation4], %s259_s12, %s259_s12, %s260_s13  }
   0xe   :  { %s261_s16 = smov [#allocation6]  }
   0xf   :  { %s27_s17 = sshll.u32 %s261_s16, 4  ;;  %s28_s17 = int_to_ptr.vmem [resolvable:$true] %s27_s17 }
  0x10   :  { %s220_s18 = scalar_lea.vmem %s28_s17, 512  ;;  %p225_p6 = scmp.lt.s32.totalorder %s28_s17, %s28_s17 }
  0x11   :  { %p221_p5 = scmp.ne.s32.totalorder %s28_s17, %s220_s18  ;;  %p226_p7 = scmp.lt.s32.totalorder %s220_s18, %s220_s18 }
  0x13   :  { %p227_p8 = por %p226_p7, %p225_p6 }
  0x15   :  { %p228_p9 = pnand %p227_p8, %p221_p5 }
  0x17   :  { %231 = shalt.err (!%p228_p9)
}
  0x18   :  { %33 = dma.hbm_to_vmem [thread:$0]  %s306_s1, 512, %s28_s17, [#allocation7], %s259_s12, %s259_s12, %s260_s13  }
  0x19   :  { %252 = dma.done.wait [#allocation4], 256  }
  0x1a   :  { %253 = vsyncadd [#allocation4], 4294967040 }
  0x1b   :  { %254 = dma.done.wait [#allocation7], 512  }
  0x1c   :  { %255 = vsyncadd [#allocation7], 4294966784  ;;  %vm44_vm0 = vcmask 785408   ;;  %v262_v0 = vmov 0.0   ;;  %vm55_vm1 = vcmask 261120   ;;  %v54_v1 = vld [vmem:[#allocation6 + $0x18] sm:$0xff] }
  0x1d   :  { %46 = vst.msk [vmem:[#allocation2 + $0x8] sm:$0xff] %vm44_vm0, %v262_v0  ;;  %45 = vst.msk [vmem:[#allocation2] sm:$0xff] %vm44_vm0, %v262_v0  ;;  %v53_v2 = vld [vmem:[#allocation6 + $0x10] sm:$0xff]  ;;  %175 = vmatprep.subr.mxu0 %v54_v1  ;;  %v52_v4 = vld [vmem:[#allocation6 + $0x8] sm:$0xff]  ;;  %s263_s0 = smov [#allocation8]  }
  0x1e   :  { %v49_v3 = vld [vmem:[#allocation3] sm:$0xff]  ;;  %176 = vmatpush3.msra.mxu0 %v54_v1  ;;  %v51_v5 = vld [vmem:[#allocation6] sm:$0xff]  ;;  %v50_v6 = vld [vmem:[#allocation3 + $0x8] sm:$0xff]  ;;  %s154_s1 = sshll.u32 %s263_s0, 4  ;;  %s155_s1 = int_to_ptr.vmem [resolvable:$true] %s154_s1 }
  0x1f   :  { %183 = vmatprep.mubr.msk.f32.mxu0 %vm55_vm1, %v49_v3  ;;  %177 = vmatprep.subr.mxu0 %v53_v2  ;;  %s232_s21 = scalar_lea.vmem %s155_s1, 256  ;;  %p237_p11 = scmp.lt.s32.totalorder %s155_s1, %s155_s1 }
  0x20   :  { %178 = vmatpush3.msra.mxu0 %v53_v2  ;;  %p233_p10 = scmp.ne.s32.totalorder %s155_s1, %s232_s21  ;;  %p238_p12 = scmp.lt.s32.totalorder %s232_s21, %s232_s21 }
  0x21   :  { %179 = vmatprep.subr.mxu0 %v52_v4 }
  0x22   :  { %180 = vmatpush3.msra.mxu0 %v52_v4  ;;  %p239_p13 = por %p238_p12, %p237_p11 }
  0x23   :  { %181 = vmatprep.subr.mxu0 %v51_v5 }
  0x24   :  { %182 = vmatpush3.msra.mxu0 %v51_v5  ;;  %v48_v7 = vld [vmem:[#allocation2 + $0x8] sm:$0xff]  ;;  %v47_v9 = vld [vmem:[#allocation2] sm:$0xff]  ;;  %p240_p0 = pnand %p239_p13, %p233_p10 }
  0x25   :  { %184 = vmatmul.mubr.msk.f32.vlgmr.msra.gmra.mxu0 %vm55_vm1, %v50_v6 }
  0xe5   :  { %v185_v8 = vpop.f32.mrf.mxu0 }
  0xe6   :  { %v138_v10 = vadd.f32 %v185_v8, %v48_v7 }
  0xe7   :  { %v128_v11 = vpop.f32.mrf.mxu0 }
  0xe8   :  { %141 = vst.msk [vmem:[#allocation2 + $0x8] sm:$0xff] %vm44_vm0, %v138_v10  ;;  %v137_v12 = vadd.f32 %v128_v11, %v47_v9 }
  0xea   :  { %140 = vst.msk [vmem:[#allocation2] sm:$0xff] %vm44_vm0, %v137_v12 }
  0xef   :  { %v146_v13 = vld [vmem:[#allocation2 + $0x8] sm:$0xff] }
  0xf0   :  { %148 = vst.msk [vmem:[#allocation8 + $0x8] sm:$0xff] %vm44_vm0, %v146_v13 }
  0xf1   :  { %v145_v14 = vld [vmem:[#allocation2] sm:$0xff] }
  0xf2   :  { %147 = vst.msk [vmem:[#allocation8] sm:$0xff] %vm44_vm0, %v145_v14 }
  0xf3   :  { %243 = shalt.err (!%p240_p0)
}
  0xf4   :  { %160 = dma.vmem_to_hbm [thread:$0]  %s155_s1, 256, %s307_s2, [#allocation5], %s259_s12, %s259_s12, %s260_s13  }
  0xf5   :  { %256 = dma.done.wait [#allocation5], 256  }
  0xf6   :  { %257 = vsyncadd [#allocation5], 4294967040 }
  0xf7   :  { %164 = vsyncpa [#allocation4], 1 }
  0xf8   :  { %165 = vsyncpa [#allocation7], 1 }
  0xf9   :  { %166 = vsyncpa [#allocation5], 1 }

</bundles_post_ra>
